<compile_context>
chip_gen: v7x
topology: tpu7x:2x2x1
jax: 0.10.0
libtpu: 0.0.40
codegen_flags: <defaults>
</compile_context>

<pallas_src>
import jax
import jax.numpy as jnp
from jax.experimental import pallas as pl
from jax.experimental.pallas import tpu as pltpu

LANE = 128   # TPU lane width
OUT_W = 8    # value-head output slab width; the real value lives in column 0


def _round_up(x, m):
    return ((x + m - 1) // m) * m


def _device_kind():
    try:
        return jax.devices()[0].device_kind.lower()
    except Exception:
        return ""


def _auto_matmul_dtype():
    # bf16 MXU operands on v6e / v7x (keep f32 accumulation + f32 tanh);
    # f32 on v5e and older (no bf16 VPU/EUP path there).
    kind = _device_kind()
    if "v6" in kind or "v7" in kind:
        return jnp.bfloat16
    return jnp.float32


def _tensorcores_per_chip():
    # v7x has 2 TensorCores per chip; earlier generations have 1.
    return 2 if "v7" in _device_kind() else 1


def _make_critic_kernel(use_tanh):
    act = jnp.tanh if use_tanh else (lambda x: jnp.maximum(x, 0.0))

    def _critic_kernel(s_ref, w1_ref, b1_ref, w2_ref, b2_ref, w3_ref, b3_ref,
                       v_ref):
        wdt = w1_ref.dtype
        # fc1 + act   (K = state_dim, un-padded; Mosaic pads K for the MXU)
        h1 = act(
            jnp.dot(s_ref[...].astype(wdt), w1_ref[...],
                    preferred_element_type=jnp.float32) + b1_ref[...])
        # fc2 + act
        h2 = act(
            jnp.dot(h1.astype(wdt), w2_ref[...],
                    preferred_element_type=jnp.float32) + b2_ref[...])
        # fc3 (value head): narrow [bt, OUT_W] slab, real value in column 0
        v_ref[...] = (
            jnp.dot(h2.astype(wdt), w3_ref[...],
                    preferred_element_type=jnp.float32) + b3_ref[...])

    return _critic_kernel


def prepare_critic_params(params, matmul_dtype=None):
    """One-time conversion of raw Critic params into the kernel layout.

    Raw params (torch-equivalent, weights stored as [in, out], biases [1, out]):
      w1 [S,H], b1 [1,H], w2 [H,H], b2 [1,H], w3 [H,1], b3 [1,1]
    Hidden is zero-padded to a multiple of 128 lanes, the value head to OUT_W
    columns; weights are optionally cast to bf16 (biases stay f32).  Do this
    ONCE so the per-call wrapper does no weight reshuffling.
    """
    if matmul_dtype is None:
        matmul_dtype = _auto_matmul_dtype()
    _, H = params["w1"].shape
    Hp = _round_up(H, LANE)
    ph = Hp - H
    f32 = jnp.float32
    return {
        "w1": jnp.pad(params["w1"], ((0, 0), (0, ph))).astype(matmul_dtype),
        "b1": jnp.pad(params["b1"], ((0, 0), (0, ph))).astype(f32),
        "w2": jnp.pad(params["w2"], ((0, ph), (0, ph))).astype(matmul_dtype),
        "b2": jnp.pad(params["b2"], ((0, 0), (0, ph))).astype(f32),
        "w3": jnp.pad(params["w3"], ((0, ph), (0, OUT_W - 1))).astype(matmul_dtype),
        "b3": jnp.pad(params["b3"], ((0, 0), (0, OUT_W - 1))).astype(f32),
    }


def critic_forward(s, prepared, *, batch_tile=2048, use_tanh=True):
    """v_s = fc3(act(fc2(act(fc1(s))))) as one fused Pallas TPU kernel.

    s: [B, state_dim] float32;  prepared: output of prepare_critic_params.
    Returns [B, 1] float32.
    """
    B, S = s.shape
    Hp = prepared["w1"].shape[1]
    assert prepared["w1"].shape[0] == S

    # --- batch tiling ---------------------------------------------------
    # One maximal tile on single-TC chips (grid steps are a sequential loop
    # there, ~0.35us/step overhead).  On v7x split 2 ways only when each
    # TensorCore gets >= 512 rows.
    b8 = _round_up(B, 8)
    grid_n = max(1, pl.cdiv(b8, max(batch_tile, 8)))
    if _tensorcores_per_chip() >= 2 and grid_n == 1 and b8 >= 1024:
        grid_n = 2
    bt = _round_up(pl.cdiv(b8, grid_n), 8)
    B_pad = grid_n * bt

    # Only the batch axis is (zero-)padded; the feature axis keeps its native
    # width and f32 dtype in HBM.
    s_in = s if B_pad == B else jnp.pad(s, ((0, B_pad - B), (0, 0)))

    def full_spec(arr):
        return pl.BlockSpec(arr.shape, lambda i: (0,) * arr.ndim)

    in_specs = [
        pl.BlockSpec((bt, S), lambda i: (i, 0)),        # s (batch-tiled)
        full_spec(prepared["w1"]), full_spec(prepared["b1"]),
        full_spec(prepared["w2"]), full_spec(prepared["b2"]),
        full_spec(prepared["w3"]), full_spec(prepared["b3"]),
    ]
    out_specs = pl.BlockSpec((bt, OUT_W), lambda i: (i, 0))
    out_shape = jax.ShapeDtypeStruct((B_pad, OUT_W), jnp.float32)

    wbytes = sum(int(prepared[k].size) * prepared[k].dtype.itemsize
                 for k in ("w1", "b1", "w2", "b2", "w3", "b3"))
    flops = 2 * B_pad * (S * Hp + Hp * Hp + Hp * OUT_W)
    transcendentals = 2 * B_pad * Hp
    bytes_accessed = (B_pad * S * s.dtype.itemsize + wbytes
                      + B_pad * OUT_W * 4)

    fn = pl.pallas_call(
        _make_critic_kernel(use_tanh),
        grid=(grid_n,),
        in_specs=in_specs,
        out_specs=out_specs,
        out_shape=out_shape,
        compiler_params=pltpu.CompilerParams(
            # TODO(synk): on v7x try pltpu.CORE_PARALLEL and verify the grid
            # actually shards across the two TensorCores.
            dimension_semantics=("parallel",),
            vmem_limit_bytes=32 * 1024 * 1024,
        ),
        cost_estimate=pl.CostEstimate(
            flops=flops,
            transcendentals=transcendentals,
            bytes_accessed=bytes_accessed,
        ),
    )
    v_padded = fn(s_in, prepared["w1"], prepared["b1"], prepared["w2"],
                  prepared["b2"], prepared["w3"], prepared["b3"])
    return v_padded[:B, :1]


def init_critic_params(key, state_dim, hidden):
    """Orthogonal init matching the PyTorch Critic (gain=1.0, zero biases).
    Weights stored as [in, out] (transpose of torch's [out, in])."""
    k1, k2, k3 = jax.random.split(key, 3)
    ortho = jax.nn.initializers.orthogonal

    def make_w(k, in_f, out_f, gain):
        w = ortho(scale=gain)(k, (out_f, in_f), jnp.float32)  # torch layout
        return jnp.transpose(w)

    return {
        "w1": make_w(k1, state_dim, hidden, 1.0),
        "b1": jnp.zeros((1, hidden), jnp.float32),
        "w2": make_w(k2, hidden, hidden, 1.0),
        "b2": jnp.zeros((1, hidden), jnp.float32),
        "w3": make_w(k3, hidden, 1, 1.0),
        "b3": jnp.zeros((1, 1), jnp.float32),
    }


def _reference_forward(s, p):
    h1 = jnp.tanh(s @ p["w1"] + p["b1"])
    h2 = jnp.tanh(h1 @ p["w2"] + p["b2"])
    return h2 @ p["w3"] + p["b3"]


if __name__ == "__main__":
    # Small shapes consistent with a MuJoCo PPO critic:
    # batch=8, state_dim=16, hidden_width=32 (value output dim is 1).
    B, STATE_DIM, HIDDEN = 8, 16, 32

    key = jax.random.PRNGKey(0)
    k_params, k_s = jax.random.split(key)

    raw_params = init_critic_params(k_params, STATE_DIM, HIDDEN)
    prepared = prepare_critic_params(raw_params)        # one-time prep
    s = jax.random.normal(k_s, (B, STATE_DIM), jnp.float32)

    forward = jax.jit(critic_forward)
    v = forward(s, prepared)
    jax.block_until_ready(v)

    v_ref = _reference_forward(s, raw_params)
    assert v.shape == (B, 1)
    # bf16 matmul operands (auto-enabled on v6e/v7x) need a looser tolerance.
    tol = 3e-2 if prepared["w1"].dtype == jnp.bfloat16 else 1e-5
    assert jnp.allclose(v, v_ref, atol=tol, rtol=tol)

    print("KERNEL_OK")
</pallas_src>

<mosaic_0001>
module attributes {stable_mosaic.version = 11 : i64} {
  func.func @_critic_kernel(%arg0: i32, %arg1: memref<8x16xf32, #tpu.memory_space<vmem>>, %arg2: memref<16x128xf32, #tpu.memory_space<vmem>>, %arg3: memref<1x128xf32, #tpu.memory_space<vmem>>, %arg4: memref<128x128xf32, #tpu.memory_space<vmem>>, %arg5: memref<1x128xf32, #tpu.memory_space<vmem>>, %arg6: memref<128x8xf32, #tpu.memory_space<vmem>>, %arg7: memref<1x8xf32, #tpu.memory_space<vmem>>, %arg8: memref<8x8xf32, #tpu.memory_space<vmem>>) attributes {dimension_semantics = [#tpu.dimension_semantics<parallel>], iteration_bounds = array<i64: 1>, scalar_prefetch = 0 : i64, scratch_operands = 0 : i64, tpu.core_type = #tpu.core_type<tc>, window_params = [{transform_indices = @transform_0, window_bounds = array<i64: 8, 16>}, {pipeline_mode = #tpu.pipeline_mode<synchronous>, transform_indices = @transform_1, window_bounds = array<i64: 16, 128>}, {pipeline_mode = #tpu.pipeline_mode<synchronous>, transform_indices = @transform_2, window_bounds = array<i64: 1, 128>}, {pipeline_mode = #tpu.pipeline_mode<synchronous>, transform_indices = @transform_3, window_bounds = array<i64: 128, 128>}, {pipeline_mode = #tpu.pipeline_mode<synchronous>, transform_indices = @transform_4, window_bounds = array<i64: 1, 128>}, {pipeline_mode = #tpu.pipeline_mode<synchronous>, transform_indices = @transform_5, window_bounds = array<i64: 128, 8>}, {pipeline_mode = #tpu.pipeline_mode<synchronous>, transform_indices = @transform_6, window_bounds = array<i64: 1, 8>}, {transform_indices = @transform_7, window_bounds = array<i64: 8, 8>}]} {
    %c0 = arith.constant 0 : index
    %c0_0 = arith.constant 0 : index
    %0 = vector.load %arg1[%c0, %c0_0] : memref<8x16xf32, #tpu.memory_space<vmem>>, vector<8x16xf32>
    %c0_1 = arith.constant 0 : index
    %c0_2 = arith.constant 0 : index
    %1 = vector.load %arg2[%c0_1, %c0_2] : memref<16x128xf32, #tpu.memory_space<vmem>>, vector<16x128xf32>
    %cst = arith.constant dense<0.000000e+00> : vector<8x128xf32>
    %2 = tpu.matmul %0, %1, %cst {dimension_numbers = #tpu.dot_dimension_numbers<[1], [0], [0], [1], [0, 0, 1, 1], [], []>} : vector<8x16xf32>, vector<16x128xf32>, vector<8x128xf32> -> vector<8x128xf32>
    %c0_3 = arith.constant 0 : index
    %c0_4 = arith.constant 0 : index
    %3 = vector.load %arg3[%c0_3, %c0_4] : memref<1x128xf32, #tpu.memory_space<vmem>>, vector<1x128xf32>
    %4 = vector.broadcast %3 : vector<1x128xf32> to vector<8x128xf32>
    %5 = arith.addf %2, %4 : vector<8x128xf32>
    %6 = math.tanh %5 : vector<8x128xf32>
    %c0_5 = arith.constant 0 : index
    %c0_6 = arith.constant 0 : index
    %7 = vector.load %arg4[%c0_5, %c0_6] : memref<128x128xf32, #tpu.memory_space<vmem>>, vector<128x128xf32>
    %cst_7 = arith.constant dense<0.000000e+00> : vector<8x128xf32>
    %8 = tpu.matmul %6, %7, %cst_7 {dimension_numbers = #tpu.dot_dimension_numbers<[1], [0], [0], [1], [0, 0, 1, 1], [], []>} : vector<8x128xf32>, vector<128x128xf32>, vector<8x128xf32> -> vector<8x128xf32>
    %c0_8 = arith.constant 0 : index
    %c0_9 = arith.constant 0 : index
    %9 = vector.load %arg5[%c0_8, %c0_9] : memref<1x128xf32, #tpu.memory_space<vmem>>, vector<1x128xf32>
    %10 = vector.broadcast %9 : vector<1x128xf32> to vector<8x128xf32>
    %11 = arith.addf %8, %10 : vector<8x128xf32>
    %12 = math.tanh %11 : vector<8x128xf32>
    %c0_10 = arith.constant 0 : index
    %c0_11 = arith.constant 0 : index
    %13 = vector.load %arg6[%c0_10, %c0_11] : memref<128x8xf32, #tpu.memory_space<vmem>>, vector<128x8xf32>
    %cst_12 = arith.constant dense<0.000000e+00> : vector<8x8xf32>
    %14 = tpu.matmul %12, %13, %cst_12 {dimension_numbers = #tpu.dot_dimension_numbers<[1], [0], [0], [1], [0, 0, 1, 1], [], []>} : vector<8x128xf32>, vector<128x8xf32>, vector<8x8xf32> -> vector<8x8xf32>
    %c0_13 = arith.constant 0 : index
    %c0_14 = arith.constant 0 : index
    %15 = vector.load %arg7[%c0_13, %c0_14] : memref<1x8xf32, #tpu.memory_space<vmem>>, vector<1x8xf32>
    %16 = vector.broadcast %15 : vector<1x8xf32> to vector<8x8xf32>
    %17 = arith.addf %14, %16 : vector<8x8xf32>
    %c0_15 = arith.constant 0 : index
    %c0_16 = arith.constant 0 : index
    %18 = vector.load %arg8[%c0_15, %c0_16] : memref<8x8xf32, #tpu.memory_space<vmem>>, vector<8x8xf32>
    tpu.vector_store %arg8[%c0_15, %c0_16], %17 {strides = array<i32>} : memref<8x8xf32, #tpu.memory_space<vmem>>, vector<8x8xf32>,
    return
  }
  func.func @transform_0(%arg0: i32) -> (i32, i32) {
    %c0_i32 = arith.constant 0 : i32
    %c0_i32_0 = arith.constant 0 : i32
    return %arg0, %c0_i32 : i32, i32
  }
  func.func @transform_1(%arg0: i32) -> (i32, i32) {
    %c0_i32 = arith.constant 0 : i32
    %c0_i32_0 = arith.constant 0 : i32
    %c0_i32_1 = arith.constant 0 : i32
    return %c0_i32, %c0_i32_0 : i32, i32
  }
  func.func @transform_2(%arg0: i32) -> (i32, i32) {
    %c0_i32 = arith.constant 0 : i32
    %c0_i32_0 = arith.constant 0 : i32
    %c0_i32_1 = arith.constant 0 : i32
    return %c0_i32, %c0_i32_0 : i32, i32
  }
  func.func @transform_3(%arg0: i32) -> (i32, i32) {
    %c0_i32 = arith.constant 0 : i32
    %c0_i32_0 = arith.constant 0 : i32
    %c0_i32_1 = arith.constant 0 : i32
    return %c0_i32, %c0_i32_0 : i32, i32
  }
  func.func @transform_4(%arg0: i32) -> (i32, i32) {
    %c0_i32 = arith.constant 0 : i32
    %c0_i32_0 = arith.constant 0 : i32
    %c0_i32_1 = arith.constant 0 : i32
    return %c0_i32, %c0_i32_0 : i32, i32
  }
  func.func @transform_5(%arg0: i32) -> (i32, i32) {
    %c0_i32 = arith.constant 0 : i32
    %c0_i32_0 = arith.constant 0 : i32
    %c0_i32_1 = arith.constant 0 : i32
    return %c0_i32, %c0_i32_0 : i32, i32
  }
  func.func @transform_6(%arg0: i32) -> (i32, i32) {
    %c0_i32 = arith.constant 0 : i32
    %c0_i32_0 = arith.constant 0 : i32
    %c0_i32_1 = arith.constant 0 : i32
    return %c0_i32, %c0_i32_0 : i32, i32
  }
  func.func @transform_7(%arg0: i32) -> (i32, i32) {
    %c0_i32 = arith.constant 0 : i32
    %c0_i32_0 = arith.constant 0 : i32
    return %arg0, %c0_i32 : i32, i32
  }
}

</mosaic_0001>

<bundles_post_ra>
// kernel: critic_forward.1
= control target key start
LH: loop header
LB: loop body
LE: loop exit
PB: predicated region body
PF: predicated region fallthrough
CT: control target
= control target key end

     0   :  { %12 = vsyncpa [#allocation3], 0  ;;  %s518_s24 = smov [#allocation2]   ;;  %s708_s0 = inlined_call_operand.hbm [shape: f32[8,16], index: 0, kind: input, shape index: {}]   ;;  %s709_s1 = inlined_call_operand.vmem [shape: f32[16,128], index: 1, kind: input, shape index: {}]   ;;  %s710_s2 = inlined_call_operand.vmem [shape: f32[1,128], index: 2, kind: input, shape index: {}]   ;;  %s711_s3 = inlined_call_operand.vmem [shape: f32[128,128], index: 3, kind: input, shape index: {}]   ;;  %s712_s4 = inlined_call_operand.vmem [shape: f32[1,128], index: 4, kind: input, shape index: {}]   ;;  %s713_s5 = inlined_call_operand.vmem [shape: f32[128,8], index: 5, kind: input, shape index: {}]   ;;  %s714_s6 = inlined_call_operand.vmem [shape: f32[1,8], index: 6, kind: input, shape index: {}]   ;;  %s715_s7 = inlined_call_operand.vmem [shape: f32[8,8], index: 7, kind: output, shape index: {}]  }
   0x1   :  { %s19_s25 = sshll.u32 %s518_s24, 4  ;;  %s494_s28 = scalar_lea.hbm %s708_s0, 128  ;;  %s20_s25 = int_to_ptr.vmem [resolvable:$true] %s19_s25 }
   0x2   :  { %p495_p0 = scmp.ne.s32.totalorder %s708_s0, %s494_s28  ;;  %p498_p1 = scmp.lt.u32.totalorder %s494_s28, %s708_s0 }
   0x4   :  { %p500_p2 = pnand %p498_p1, %p495_p0 }
   0x6   :  { %503 = shalt.err (!%p500_p2)
}
   0x7   :  { %s504_s10 = scalar_lea.vmem %s20_s25, 128  ;;  %p509_p4 = scmp.lt.s32.totalorder %s20_s25, %s20_s25 }
   0x8   :  { %p505_p3 = scmp.ne.s32.totalorder %s20_s25, %s504_s10  ;;  %p510_p5 = scmp.lt.s32.totalorder %s504_s10, %s504_s10 }
   0xa   :  { %p511_p6 = por %p510_p5, %p509_p4 }
   0xc   :  { %p512_p7 = pnand %p511_p6, %p505_p3 }
   0xe   :  { %515 = shalt.err (!%p512_p7)
}
   0xf   :  { %22 = dma.hbm_to_vmem [thread:$0]  %s708_s0, 128, %s20_s25, [#allocation3]  }
  0x10   :  { %516 = dma.done.wait [#allocation3], 128  }
  0x11   :  { %517 = vsyncadd [#allocation3], 4294967168  ;;  %v519_v0 = vmov 0.0|0.0   ;;  %vm520_vm0 = vmmov 0   ;;  %v521_v1 = vmov 0.0   ;;  %v39_v2 = vld [vmem:[%s709_s1] sm:$0xff] }
  0x12   :  { %435 = vmatprep.subr.bf16.mxu0 %v519_v0  ;;  %362 = vmatprep.mubr.msk.f32.mxu0 %vm520_vm0, %v521_v1  ;;  %v40_v3 = vld [vmem:[%s709_s1 + $0x8] sm:$0xff]  ;;  %v123_v5 = vld [vmem:[%s711_s3] sm:$0xff]  ;;  %v125_v7 = vld [vmem:[%s711_s3 + $0x10] sm:$0xff]  ;;  %vm48_vm1 = vcmask 130048   ;;  %vm310_vm2 = vcmask 64512  }
  0x13   :  { %438 = vmatprep.subr.bf16.mxu1 %v519_v0  ;;  %397 = vmatprep.mubr.msk.f32.mxu1 %vm520_vm0, %v521_v1  ;;  %v436_v4 = vpack.c.bf16 %v40_v3, %v39_v2  ;;  %v124_v6 = vld [vmem:[%s711_s3 + $0x8] sm:$0xff]  ;;  %v126_v9 = vld [vmem:[%s711_s3 + $0x18] sm:$0xff]  ;;  %v38_v10 = vld [vmem:[#allocation2] sm:$0xff] }
  0x14   :  { %v439_v8 = vpack.c.bf16 %v124_v6, %v123_v5  ;;  %v442_v11 = vpack.c.bf16 %v126_v9, %v125_v7  ;;  %v127_v12 = vld [vmem:[%s711_s3 + $0x20] sm:$0xff]  ;;  %v128_v13 = vld [vmem:[%s711_s3 + $0x28] sm:$0xff]  ;;  %v129_v15 = vld [vmem:[%s711_s3 + $0x30] sm:$0xff] }
  0x15   :  { %437 = vmatpush3.bf16.msra.mxu0 %v436_v4  ;;  %v445_v14 = vpack.c.bf16 %v128_v13, %v127_v12  ;;  %v130_v16 = vld [vmem:[%s711_s3 + $0x38] sm:$0xff]  ;;  %v131_v18 = vld [vmem:[%s711_s3 + $0x40] sm:$0xff]  ;;  %v132_v19 = vld [vmem:[%s711_s3 + $0x48] sm:$0xff] }
  0x16   :  { %440 = vmatpush3.bf16.msra.mxu1 %v439_v8  ;;  %462 = vmatprep.subr.bf16.mxu0 %v519_v0  ;;  %v448_v17 = vpack.c.bf16 %v130_v16, %v129_v15  ;;  %v451_v20 = vpack.c.bf16 %v132_v19, %v131_v18  ;;  %v133_v21 = vld [vmem:[%s711_s3 + $0x50] sm:$0xff]  ;;  %v134_v22 = vld [vmem:[%s711_s3 + $0x58] sm:$0xff]  ;;  %v135_v24 = vld [vmem:[%s711_s3 + $0x60] sm:$0xff] }
  0x17   :  { %441 = vmatprep.subr.bf16.mxu1 %v519_v0  ;;  %v454_v23 = vpack.c.bf16 %v134_v22, %v133_v21  ;;  %v136_v25 = vld [vmem:[%s711_s3 + $0x68] sm:$0xff]  ;;  %v137_v27 = vld [vmem:[%s711_s3 + $0x70] sm:$0xff]  ;;  %v138_v28 = vld [vmem:[%s711_s3 + $0x78] sm:$0xff] }
  0x18   :  { %363 = vmatmul.mubr.msk.f32.vlgmr.msra.gmra.mrb[0].mxu0 %vm48_vm1, %v38_v10  ;;  %v457_v26 = vpack.c.bf16 %v136_v25, %v135_v24  ;;  %v460_v29 = vpack.c.bf16 %v138_v28, %v137_v27  ;;  %v217_v30 = vld [vmem:[%s713_s5] sm:$0xff]  ;;  %v218_v31 = vld [vmem:[%s713_s5 + $0x8] sm:$0xff]  ;;  %v219_v32 = vld [vmem:[%s713_s5 + $0x10] sm:$0xff] }
  0x19   :  { %432 = vmatprep.mubr.msk.f32.mxu0 %vm520_vm0, %v521_v1  ;;  %v463_v33 = vpack.c.bf16 %v218_v31, %v217_v30  ;;  %v220_v34 = vld [vmem:[%s713_s5 + $0x18] sm:$0xff]  ;;  %v221_v36 = vld [vmem:[%s713_s5 + $0x20] sm:$0xff]  ;;  %v222_v37 = vld [vmem:[%s713_s5 + $0x28] sm:$0xff] }
  0x1a   :  { %443 = vmatpush3.bf16.msra.mxu1 %v442_v11  ;;  %v466_v35 = vpack.c.bf16 %v220_v34, %v219_v32  ;;  %v469_v38 = vpack.c.bf16 %v222_v37, %v221_v36  ;;  %v223_v39 = vld [vmem:[%s713_s5 + $0x30] sm:$0xff]  ;;  %v224_v40 = vld [vmem:[%s713_s5 + $0x38] sm:$0xff]  ;;  %v225_v42 = vld [vmem:[%s713_s5 + $0x40] sm:$0xff] }
  0x1b   :  { %444 = vmatprep.subr.bf16.mxu1 %v519_v0  ;;  %464 = vmatpush3.bf16.msra.mxu0 %v463_v33  ;;  %v472_v41 = vpack.c.bf16 %v224_v40, %v223_v39  ;;  %v226_v43 = vld [vmem:[%s713_s5 + $0x48] sm:$0xff]  ;;  %v317_v45 = vld [vmem:[%s710_s2] ss:$0 sm:$0xff]  ;;  %v227_v50 = vld [vmem:[%s713_s5 + $0x50] sm:$0xff] }
  0x1c   :  { %465 = vmatprep.subr.bf16.mxu0 %v519_v0  ;;  %v475_v44 = vpack.c.bf16 %v226_v43, %v225_v42  ;;  %v228_v51 = vld [vmem:[%s713_s5 + $0x58] sm:$0xff]  ;;  %v229_v53 = vld [vmem:[%s713_s5 + $0x60] sm:$0xff]  ;;  %v230_v54 = vld [vmem:[%s713_s5 + $0x68] sm:$0xff] }
  0x1d   :  { %v478_v52 = vpack.c.bf16 %v228_v51, %v227_v50  ;;  %v481_v55 = vpack.c.bf16 %v230_v54, %v229_v53  ;;  %v231_v56 = vld [vmem:[%s713_s5 + $0x70] sm:$0xff]  ;;  %v232_v57 = vld [vmem:[%s713_s5 + $0x78] sm:$0xff]  ;;  %v319_v59 = vld [vmem:[%s712_s4] ss:$0 sm:$0xff] }
  0x1e   :  { %446 = vmatpush3.bf16.msra.mxu1 %v445_v14  ;;  %v484_v58 = vpack.c.bf16 %v232_v57, %v231_v56  ;;  %v320_v1 = vld [vmem:[%s714_s6] ss:$0 sm:$0xff] }
  0x1f   :  { %447 = vmatprep.subr.bf16.mxu1 %v519_v0  ;;  %467 = vmatpush3.bf16.msra.mxu0 %v466_v35 }
  0x20   :  { %468 = vmatprep.subr.bf16.mxu0 %v519_v0 }
  0x22   :  { %449 = vmatpush3.bf16.msra.mxu1 %v448_v17 }
  0x23   :  { %450 = vmatprep.subr.bf16.mxu1 %v519_v0  ;;  %470 = vmatpush3.bf16.msra.mxu0 %v469_v38 }
  0x24   :  { %471 = vmatprep.subr.bf16.mxu0 %v519_v0 }
  0x26   :  { %452 = vmatpush3.bf16.msra.mxu1 %v451_v20 }
  0x27   :  { %453 = vmatprep.subr.bf16.mxu1 %v519_v0  ;;  %473 = vmatpush3.bf16.msra.mxu0 %v472_v41 }
  0x28   :  { %474 = vmatprep.subr.bf16.mxu0 %v519_v0 }
  0x2a   :  { %455 = vmatpush3.bf16.msra.mxu1 %v454_v23 }
  0x2b   :  { %456 = vmatprep.subr.bf16.mxu1 %v519_v0  ;;  %476 = vmatpush3.bf16.msra.mxu0 %v475_v44 }
  0x2c   :  { %477 = vmatprep.subr.bf16.mxu0 %v519_v0 }
  0x2e   :  { %458 = vmatpush3.bf16.msra.mxu1 %v457_v26 }
  0x2f   :  { %459 = vmatprep.subr.bf16.mxu1 %v519_v0  ;;  %479 = vmatpush3.bf16.msra.mxu0 %v478_v52 }
  0x30   :  { %480 = vmatprep.subr.bf16.mxu0 %v519_v0 }
  0x32   :  { %461 = vmatpush3.bf16.msra.mxu1 %v460_v29 }
  0x33   :  { %482 = vmatpush3.bf16.msra.mxu0 %v481_v55 }
  0x34   :  { %483 = vmatprep.subr.bf16.mxu0 %v519_v0 }
  0x37   :  { %485 = vmatpush3.bf16.msra.mxu0 %v484_v58 }
  0xeb   :  { %v118_v46 = vpop.f32.mrb[0].mxu0 }
  0xec   :  { %v119_v47 = vadd.f32 %v317_v45, %v118_v46  ;;  %v364_v48 = vpop.f32.mrb[1].mxu0 }
  0xee   :  { %490 = vtanh.f32 %v119_v47 }
  0xf8   :  { %v491_v49 = vpop.eup %490 }
  0xf9   :  { %398 = vmatmul.mubr.f32.vlgmr.msra.gmra.mrb[0].mxu1 %v491_v49 }
 0x1cc   :  { %v212_v60 = vpop.f32.mrb[0].mxu1 }
 0x1cd   :  { %v213_v61 = vadd.f32 %v319_v59, %v212_v60  ;;  %v399_v62 = vpop.f32.mrb[1].mxu1 }
 0x1cf   :  { %492 = vtanh.f32 %v213_v61 }
 0x1d9   :  { %v493_v63 = vpop.eup %492 }
 0x1da   :  { %433 = vmatmul.mubr.f32.vlgmr.msra.gmra.mrb[2].mxu0 %v493_v63 }
 0x2ad   :  { %v306_v2 = vpop.f32.mrb[2].mxu0 }
 0x2ae   :  { %v307_v3 = vadd.f32 %v320_v1, %v306_v2  ;;  %v434_v4 = vpop.f32.mrb[3].mxu0 }
 0x2b0   :  { %311 = vst.msk [vmem:[%s715_s7] sm:$0xff] %vm310_vm2, %v307_v3 }
 0x2b1   :  { %316 = vsyncpa [#allocation3], 1 }

</bundles_post_ra>
